<compile_context>
chip_gen: v7x
topology: tpu7x:2x2x1
jax: 0.10.0
libtpu: 0.0.40
codegen_flags: <defaults>
</compile_context>

<pallas_src>
import jax
import jax.numpy as jnp
from jax import lax
from jax.experimental import pallas as pl
from jax.experimental.pallas import tpu as pltpu


def _pick_block_rows(H, W, itemsize):
    # Target a few-MiB tile so the double-buffered pipeline stays well under the
    # default scoped-VMEM limit on every generation (16 MiB v5e, 32 MiB v6e/v7x).
    target_bytes = 4 * 1024 * 1024
    rows = target_bytes // max(1, W * itemsize)
    if rows >= H:
        return H                      # whole image fits one block (block == full dims)
    rows = min(rows, 512)
    rows = max(8, (rows // 8) * 8)    # tiled blocks must keep a multiple-of-8 row count
    return int(rows)


def _make_tv_kernel(*, H, W, TM, count_h, count_w, aligned_w):
    """Builds the row-tiled TV kernel with static shape/count parameters baked in."""
    partial = (H % TM) != 0            # only the last tile can be ragged
    n_tiles = pl.cdiv(H, TM)

    def kernel(x_ref, o_ref, hacc_ref, wacc_ref, carry_ref):
        i = pl.program_id(0)

        @pl.when(i == 0)
        def _init():
            hacc_ref[...] = jnp.zeros_like(hacc_ref)
            wacc_ref[...] = jnp.zeros_like(wacc_ref)

        x = x_ref[...].astype(jnp.float32)            # (TM, W) tile, f32 accumulation

        # ---------------- width-direction diffs (w_tv) ----------------
        if W > 1:
            if aligned_w:
                # Cyclic neighbor via XLU roll (no lane-misaligned slice copy),
                # then subtract the single wrap-around column so the total over
                # all lanes equals the true sum of adjacent-column diffs.
                x_next = pltpu.roll(x, shift=W - 1, axis=1)   # x_next[:, c] == x[:, (c+1) % W]
                dcyc = x_next - x
                if partial:
                    row = lax.broadcasted_iota(jnp.int32, (TM, W), 0) + i * TM
                    dcyc = jnp.where(row < H, dcyc, 0.0)
                col_sums = jnp.sum(dcyc * dcyc, axis=0, keepdims=True)        # (1, W)
                wrap = x[:, W - 1:W] - x[:, 0:1]                              # (TM, 1)
                if partial:
                    rowc = lax.broadcasted_iota(jnp.int32, (TM, 1), 0) + i * TM
                    wrap = jnp.where(rowc < H, wrap, 0.0)
                wrap_sum = jnp.sum(wrap * wrap, axis=0, keepdims=True)        # (1, 1)
                lane0 = lax.broadcasted_iota(jnp.int32, (1, W), 1) == 0
                wacc_ref[...] += jnp.where(lane0, col_sums - wrap_sum, col_sums)
            else:
                # Small / unaligned widths: plain slice formulation.
                dw = x[:, 1:] - x[:, :W - 1]                                  # (TM, W-1)
                if partial:
                    row = lax.broadcasted_iota(jnp.int32, (TM, W - 1), 0) + i * TM
                    dw = jnp.where(row < H, dw, 0.0)
                wacc_ref[...] += jnp.sum(dw * dw, axis=0, keepdims=True)      # (1, W-1)

        # ---------------- height-direction diffs (h_tv), intra-tile ----------------
        if TM > 1:
            dh = x[1:, :] - x[:TM - 1, :]                                     # (TM-1, W)
            if partial:
                rowh = lax.broadcasted_iota(jnp.int32, (TM - 1, W), 0) + i * TM
                dh = jnp.where(rowh < H - 1, dh, 0.0)                         # pair (r, r+1) in image
            hacc_ref[...] += jnp.sum(dh * dh, axis=0, keepdims=True)          # (1, W)

        # ---------------- height-direction halo across tiles ----------------
        if TM < H:
            @pl.when(i > 0)
            def _halo():
                bd = x[0:1, :] - carry_ref[...]          # row i*TM  vs  row i*TM - 1
                hacc_ref[...] += bd * bd

            # Carry this tile's last row; it is only consumed if a next tile exists,
            # in which case this tile lies fully inside the image.
            carry_ref[...] = x[TM - 1:TM, :]

        @pl.when(i == n_tiles - 1)
        def _finalize():
            h_tv = jnp.sum(hacc_ref[...])
            w_tv = jnp.sum(wacc_ref[...])
            # NOTE: counts intentionally cross-paired exactly as in the PyTorch module
            # (h_tv / count_h with count_h = H*(W-1), w_tv / count_w with (H-1)*W).
            o_ref[0, 0] = 2.0 * (h_tv / count_h + w_tv / count_w)

    return kernel


def tv_loss(x, block_rows=None):
    """x: any array that squeezes to 2D (e.g. (1, 1, H, W)). Returns scalar f32."""
    xs = jnp.squeeze(x)
    assert xs.ndim == 2, f"TVLoss expects input squeezing to 2D, got {xs.shape}"
    H, W = (int(d) for d in xs.shape)

    if block_rows is None:
        tm = _pick_block_rows(H, W, jnp.dtype(xs.dtype).itemsize)
    else:
        tm = min(int(block_rows), H)
        if tm < H and tm % 8 != 0:
            tm = max(8, (tm // 8) * 8)     # keep the (8, 128) tiling constraint

    aligned_w = (W % 128 == 0)
    wacc_w = W if aligned_w else max(W - 1, 1)

    count_h = float(H * (W - 1))           # numel of x[:, 1:]  (PyTorch pairing)
    count_w = float((H - 1) * W)           # numel of x[1:, :]

    kernel = _make_tv_kernel(H=H, W=W, TM=tm, count_h=count_h, count_w=count_w,
                             aligned_w=aligned_w)

    out = pl.pallas_call(
        kernel,
        out_shape=jax.ShapeDtypeStruct((1, 1), jnp.float32),
        grid=(pl.cdiv(H, tm),),
        in_specs=[pl.BlockSpec((tm, W), lambda i: (i, 0))],
        out_specs=pl.BlockSpec(memory_space=pltpu.MemorySpace.SMEM),
        scratch_shapes=[
            pltpu.VMEM((1, W), jnp.float32),        # h-direction per-lane partial sums
            pltpu.VMEM((1, wacc_w), jnp.float32),   # w-direction per-lane partial sums
            pltpu.VMEM((1, W), jnp.float32),        # carried last row (halo)
        ],
        compiler_params=pltpu.CompilerParams(
            dimension_semantics=("arbitrary",)),    # sequential: carry + accumulators
    )(xs)
    return out[0, 0]


def tv_loss_ref(x):
    """Pure-JAX reference matching the PyTorch module."""
    xs = jnp.squeeze(x).astype(jnp.float32)
    H, W = xs.shape
    count_h = H * (W - 1)
    count_w = (H - 1) * W
    w_tv = jnp.sum(jnp.square(xs[:, 1:] - xs[:, : W - 1]))
    h_tv = jnp.sum(jnp.square(xs[1:, :] - xs[: H - 1, :]))
    return 2.0 * (h_tv / count_h + w_tv / count_w)


if __name__ == "__main__":
    key = jax.random.PRNGKey(0)
    k1, k2 = jax.random.split(key)

    # NCHW input with singleton batch/channel; the module squeezes it to 2D.
    x_small = jax.random.normal(k1, (1, 1, 16, 16), dtype=jnp.float32)
    loss_small = jax.block_until_ready(tv_loss(x_small))
    ref_small = jax.block_until_ready(tv_loss_ref(x_small))
    assert jnp.allclose(loss_small, ref_small, rtol=1e-5, atol=1e-5), (loss_small, ref_small)

    # Larger image: exercises the row-tiled pipeline, halo carry, masked ragged
    # last tile (272 = 4*64 + 16) and the lane-aligned pltpu.roll path (W=256).
    x_big = jax.random.normal(k2, (1, 1, 272, 256), dtype=jnp.float32)
    loss_big = jax.block_until_ready(tv_loss(x_big, block_rows=64))
    ref_big = jax.block_until_ready(tv_loss_ref(x_big))
    assert jnp.allclose(loss_big, ref_big, rtol=1e-4, atol=1e-4), (loss_big, ref_big)

    # bf16 input is streamed as bf16 (half the HBM traffic) and accumulated in f32.
    x_bf16 = x_big.astype(jnp.bfloat16)
    loss_bf16 = jax.block_until_ready(tv_loss(x_bf16, block_rows=64))
    ref_bf16 = jax.block_until_ready(tv_loss_ref(x_bf16))
    assert jnp.allclose(loss_bf16, ref_bf16, rtol=1e-3, atol=1e-3), (loss_bf16, ref_bf16)

    print("KERNEL_OK")
</pallas_src>

<mosaic_0001>
module attributes {stable_mosaic.version = 11 : i64} {
  func.func @kernel(%arg0: i32, %arg1: memref<16x16xf32, #tpu.memory_space<vmem>>, %arg2: memref<1x1xf32, #tpu.memory_space<smem>>, %arg3: memref<1x16xf32, #tpu.memory_space<vmem>>, %arg4: memref<1x15xf32, #tpu.memory_space<vmem>>, %arg5: memref<1x16xf32, #tpu.memory_space<vmem>>) attributes {dimension_semantics = [#tpu.dimension_semantics<arbitrary>], iteration_bounds = array<i64: 1>, scalar_prefetch = 0 : i64, scratch_operands = 3 : i64, tpu.core_type = #tpu.core_type<tc>, window_params = [{transform_indices = @transform_0, window_bounds = array<i64: 16, 16>}, {transform_indices = @transform_1, window_bounds = array<i64: 1, 1>}]} {
    %c0_i32 = arith.constant 0 : i32
    %0 = arith.cmpi eq, %arg0, %c0_i32 : i32
    %1 = arith.extui %0 : i1 to i32
    %c0_i32_0 = arith.constant 0 : i32
    %2 = arith.cmpi ne, %1, %c0_i32_0 : i32
    scf.if %2 {
      %cst_13 = arith.constant 0.000000e+00 : f32
      %25 = vector.broadcast %cst_13 : f32 to vector<1x16xf32>
      %c0_14 = arith.constant 0 : index
      %c0_15 = arith.constant 0 : index
      %26 = vector.load %arg3[%c0_14, %c0_15] : memref<1x16xf32, #tpu.memory_space<vmem>>, vector<1x16xf32>
      tpu.vector_store %arg3[%c0_14, %c0_15], %25 {strides = array<i32>} : memref<1x16xf32, #tpu.memory_space<vmem>>, vector<1x16xf32>,
      %cst_16 = arith.constant 0.000000e+00 : f32
      %27 = vector.broadcast %cst_16 : f32 to vector<1x15xf32>
      %c0_17 = arith.constant 0 : index
      %c0_18 = arith.constant 0 : index
      %28 = vector.load %arg4[%c0_17, %c0_18] : memref<1x15xf32, #tpu.memory_space<vmem>>, vector<1x15xf32>
      tpu.vector_store %arg4[%c0_17, %c0_18], %27 {strides = array<i32>} : memref<1x15xf32, #tpu.memory_space<vmem>>, vector<1x15xf32>,
    } else {
    }
    %c0 = arith.constant 0 : index
    %c0_1 = arith.constant 0 : index
    %3 = vector.load %arg1[%c0, %c0_1] : memref<16x16xf32, #tpu.memory_space<vmem>>, vector<16x16xf32>
    %4 = vector.extract_strided_slice %3 {offsets = [0, 1], sizes = [16, 15], strides = [1, 1]} : vector<16x16xf32> to vector<16x15xf32>
    %5 = vector.extract_strided_slice %3 {offsets = [0, 0], sizes = [16, 15], strides = [1, 1]} : vector<16x16xf32> to vector<16x15xf32>
    %6 = arith.subf %4, %5 : vector<16x15xf32>
    %c0_2 = arith.constant 0 : index
    %c0_3 = arith.constant 0 : index
    %7 = vector.load %arg4[%c0_2, %c0_3] : memref<1x15xf32, #tpu.memory_space<vmem>>, vector<1x15xf32>
    %8 = arith.mulf %6, %6 : vector<16x15xf32>
    %cst = arith.constant dense<0.000000e+00> : vector<15xf32>
    %9 = vector.multi_reduction <add>, %8, %cst [0] : vector<16x15xf32> to vector<15xf32>
    %10 = vector.shape_cast %9 : vector<15xf32> to vector<1x15xf32>
    %11 = arith.addf %7, %10 : vector<1x15xf32>
    %c0_4 = arith.constant 0 : index
    %c0_5 = arith.constant 0 : index
    %12 = vector.load %arg4[%c0_4, %c0_5] : memref<1x15xf32, #tpu.memory_space<vmem>>, vector<1x15xf32>
    tpu.vector_store %arg4[%c0_4, %c0_5], %11 {strides = array<i32>} : memref<1x15xf32, #tpu.memory_space<vmem>>, vector<1x15xf32>,
    %13 = vector.extract_strided_slice %3 {offsets = [1, 0], sizes = [15, 16], strides = [1, 1]} : vector<16x16xf32> to vector<15x16xf32>
    %14 = vector.extract_strided_slice %3 {offsets = [0, 0], sizes = [15, 16], strides = [1, 1]} : vector<16x16xf32> to vector<15x16xf32>
    %15 = arith.subf %13, %14 : vector<15x16xf32>
    %c0_6 = arith.constant 0 : index
    %c0_7 = arith.constant 0 : index
    %16 = vector.load %arg3[%c0_6, %c0_7] : memref<1x16xf32, #tpu.memory_space<vmem>>, vector<1x16xf32>
    %17 = arith.mulf %15, %15 : vector<15x16xf32>
    %cst_8 = arith.constant dense<0.000000e+00> : vector<16xf32>
    %18 = vector.multi_reduction <add>, %17, %cst_8 [0] : vector<15x16xf32> to vector<16xf32>
    %19 = vector.shape_cast %18 : vector<16xf32> to vector<1x16xf32>
    %20 = arith.addf %16, %19 : vector<1x16xf32>
    %c0_9 = arith.constant 0 : index
    %c0_10 = arith.constant 0 : index
    %21 = vector.load %arg3[%c0_9, %c0_10] : memref<1x16xf32, #tpu.memory_space<vmem>>, vector<1x16xf32>
    tpu.vector_store %arg3[%c0_9, %c0_10], %20 {strides = array<i32>} : memref<1x16xf32, #tpu.memory_space<vmem>>, vector<1x16xf32>,
    %c0_i32_11 = arith.constant 0 : i32
    %22 = arith.cmpi eq, %arg0, %c0_i32_11 : i32
    %23 = arith.extui %22 : i1 to i32
    %c0_i32_12 = arith.constant 0 : i32
    %24 = arith.cmpi ne, %23, %c0_i32_12 : i32
    scf.if %24 {
      %c0_13 = arith.constant 0 : index
      %c0_14 = arith.constant 0 : index
      %25 = vector.load %arg3[%c0_13, %c0_14] : memref<1x16xf32, #tpu.memory_space<vmem>>, vector<1x16xf32>
      %26 = vector.shape_cast %25 : vector<1x16xf32> to vector<1x1x16xf32>
      %cst_15 = arith.constant dense<0.000000e+00> : vector<1xf32>
      %27 = vector.multi_reduction <add>, %26, %cst_15 [1, 2] : vector<1x1x16xf32> to vector<1xf32>
      %28 = vector.shape_cast %27 : vector<1xf32> to vector<1x1x1xf32>
      %29 = vector.extract %28[0, 0, 0] : f32 from vector<1x1x1xf32>
      %c0_16 = arith.constant 0 : index
      %c0_17 = arith.constant 0 : index
      %30 = vector.load %arg4[%c0_16, %c0_17] : memref<1x15xf32, #tpu.memory_space<vmem>>, vector<1x15xf32>
      %31 = vector.shape_cast %30 : vector<1x15xf32> to vector<1x1x15xf32>
      %cst_18 = arith.constant dense<0.000000e+00> : vector<1xf32>
      %32 = vector.multi_reduction <add>, %31, %cst_18 [1, 2] : vector<1x1x15xf32> to vector<1xf32>
      %33 = vector.shape_cast %32 : vector<1xf32> to vector<1x1x1xf32>
      %34 = vector.extract %33[0, 0, 0] : f32 from vector<1x1x1xf32>
      %cst_19 = arith.constant 2.400000e+02 : f32
      %35 = arith.divf %29, %cst_19 : f32
      %cst_20 = arith.constant 2.400000e+02 : f32
      %36 = arith.divf %34, %cst_20 : f32
      %37 = arith.addf %35, %36 : f32
      %cst_21 = arith.constant 2.000000e+00 : f32
      %38 = arith.mulf %cst_21, %37 : f32
      %c0_22 = arith.constant 0 : index
      %c0_23 = arith.constant 0 : index
      %39 = memref.load %arg2[%c0_22, %c0_23] : memref<1x1xf32, #tpu.memory_space<smem>>
      memref.store %38, %arg2[%c0_22, %c0_23] : memref<1x1xf32, #tpu.memory_space<smem>>
    } else {
    }
    return
  }
  func.func @transform_0(%arg0: i32) -> (i32, i32) {
    %c0_i32 = arith.constant 0 : i32
    %c0_i32_0 = arith.constant 0 : i32
    return %arg0, %c0_i32 : i32, i32
  }
  func.func @transform_1(%arg0: i32) -> (i32, i32) {
    %c0_i32 = arith.constant 0 : i32
    %c0_i32_0 = arith.constant 0 : i32
    %c0_i32_1 = arith.constant 0 : i32
    return %c0_i32, %c0_i32_0 : i32, i32
  }
}

</mosaic_0001>

<bundles_post_ra>
// kernel: tpu_custom_call.1
= control target key start
LH: loop header
LB: loop body
LE: loop exit
PB: predicated region body
PF: predicated region fallthrough
CT: control target
= control target key end

     0   :  { %6 = vsyncpa [#allocation6], 0  ;;  %s255_s0 = inlined_call_operand.hbm [shape: f32[16,16], index: 0, kind: input, shape index: {}]   ;;  %s256_s1 = inlined_call_operand.hbm [shape: f32[1,1], index: 1, kind: output, shape index: {}]  }
   0x1   :  { %7 = vsyncpa [#allocation7], 0  ;;  %s207_s6 = smov [#allocation5]   ;;  %s171_s10 = scalar_lea.hbm %s255_s0, 256 }
   0x2   :  { %s13_s7 = sshll.u32 %s207_s6, 4  ;;  %p172_p0 = scmp.ne.s32.totalorder %s255_s0, %s171_s10  ;;  %s14_s7 = int_to_ptr.vmem [resolvable:$true] %s13_s7 }
   0x3   :  { %p175_p1 = scmp.lt.u32.totalorder %s171_s10, %s255_s0 }
   0x5   :  { %p177_p2 = pnand %p175_p1, %p172_p0 }
   0x7   :  { %180 = shalt.err (!%p177_p2)
}
   0x8   :  { %s181_s15 = scalar_lea.vmem %s14_s7, 256  ;;  %p186_p4 = scmp.lt.s32.totalorder %s14_s7, %s14_s7 }
   0x9   :  { %p182_p3 = scmp.ne.s32.totalorder %s14_s7, %s181_s15  ;;  %p187_p5 = scmp.lt.s32.totalorder %s181_s15, %s181_s15 }
   0xb   :  { %p188_p6 = por %p187_p5, %p186_p4 }
   0xd   :  { %p189_p7 = pnand %p188_p6, %p182_p3 }
   0xf   :  { %192 = shalt.err (!%p189_p7)
}
  0x10   :  { %s208_s16 = smov 128   ;;  %s209_s17 = smov 8  }
  0x11   :  { %19 = dma.hbm_to_vmem [thread:$0]  %s255_s0, 256, %s14_s7, [#allocation6], %s208_s16, %s208_s16, %s209_s17  }
  0x12   :  { %203 = dma.done.wait [#allocation6], 256  }
  0x13   :  { %204 = vsyncadd [#allocation6], 4294967040  ;;  %v31_v0 = vld [vmem:[#allocation5] sm:$0xff]  ;;  %s210_s20 = smov 1   ;;  %v32_v1 = vld [vmem:[#allocation5 + $0x8] sm:$0xff]  ;;  %vm29_vm0 = vcmask 114688   ;;  %v60_v36 = vlaneseq }
  0x14   :  { %35 = vrot.lane.b32.xlu0 %v31_v0, %s210_s20  ;;  %v211_v2 = vmov 0.0   ;;  %v78_v3 = vrot.slane %v31_v0, 7  ;;  %v79_v4 = vrot.slane %v32_v1, 7  ;;  %vm77_vm1 = vcmask 1040384   ;;  %s213_s0 = smov 127   ;;  %s193_s29 = scalar_lea.hbm %s256_s1, 16 }
  0x15   :  { %30 = vst.msk [vmem:[#allocation3] sm:$0x1] %vm29_vm0, %v211_v2  ;;  %vm90_vm2 = vcmask 1046528   ;;  %vm96_vm3 = vcmask 130048   ;;  %vm98_vm4 = vcmask 129024   ;;  %vm27_vm5 = vcmask 122880   ;;  %p194_p8 = scmp.ne.s32.totalorder %s256_s1, %s193_s29  ;;  %p197_p9 = scmp.lt.u32.totalorder %s193_s29, %s256_s1 }
  0x16   :  { %v80_v5 = vsel %vm77_vm1, %v78_v3, %v79_v4  ;;  %v83_v6 = vsub.f32 %v31_v0, %v78_v3  ;;  %28 = vst.msk [vmem:[#allocation2] sm:$0x1] %vm27_vm5, %v211_v2  ;;  %vm46_vm6 = vcmask 130056   ;;  %v212_v34 = vmov 1966171168  }
  0x17   :  { %v84_v7 = vsub.f32 %v32_v1, %v80_v5  ;;  %v58_v35 = vunpack.c.l.s4 %v212_v34  ;;  %v61_v40 = vshrl.u32 %v60_v36, 7  ;;  %p199_p10 = pnand %p197_p9, %p194_p8 }
  0x18   :  { %37 = vrot.lane.b32.xlu0 %v32_v1, %s210_s20  ;;  %v86_v8 = vmul.f32 %v83_v6, %v83_v6 }
  0x19   :  { %v87_v9 = vmul.f32 %v84_v7, %v84_v7  ;;  %v59_v39 = vunpack.c.0.s8 %v58_v35 }
  0x1a   :  { %v91_v10 = vrot.slane %v86_v8, 1 }
  0x1b   :  { %v92_v11 = vrot.slane %v87_v9, 1  ;;  %v62_v43 = vsub.s32 %v59_v39, %v61_v40 }
  0x1c   :  { %v43_v49 = vld [vmem:[#allocation3] sm:$0x1] }
  0x1d   :  { %v93_v12 = vsel %vm90_vm2, %v91_v10, %v92_v11  ;;  %v99_v14 = vsel %vm98_vm4, %v92_v11, 0.0  ;;  %v85_v28 = vld [vmem:[#allocation2] sm:$0x1] }
  0x1e   :  { %v97_v13 = vsel %vm96_vm3, %v93_v12, 0.0 }
  0x1f   :  { %v100_v15 = vadd.f32 %v99_v14, %v97_v13 }
  0x21   :  { %v101_v16 = vrot.slane %v100_v15, 4 }
  0x23   :  { %v102_v17 = vadd.f32 %v101_v16, %v100_v15 }
  0x25   :  { %v103_v18 = vrot.slane %v102_v17, 2 }
  0x27   :  { %v104_v19 = vadd.f32 %v103_v18, %v102_v17 }
  0x29   :  { %v105_v21 = vrot.slane %v104_v19, 1 }
  0x2b   :  { %v106_v24 = vadd.f32 %v105_v21, %v104_v19 }
  0x2d   :  { %v107_v31 = vadd.f32 %v106_v24, %v85_v28 }
  0x2f   :  { %109 = vst.msk [vmem:[#allocation2] sm:$0x1] %vm27_vm5, %v107_v31 }
  0x36   :  { %v113_v47 = vld [vmem:[#allocation2] sm:$0x1] }
  0x37   :  { %v114_v48 = vsel %vm27_vm5, %v113_v47, 0.0 }
  0x86   :  { %v36_v20 = vpop.permute.xlu0 %35 }
  0x87   :  { %v41_v22 = vsub.f32 %v31_v0, %v36_v20 }
  0x89   :  { %v44_v25 = vmul.f32 %v41_v22, %v41_v22 }
  0x8a   :  { %v38_v23 = vpop.permute.xlu0 %37 }
  0x8b   :  { %v42_v26 = vsub.f32 %v32_v1, %v38_v23  ;;  %v47_v29 = vsel %vm46_vm6, %v44_v25, 0.0 }
  0x8d   :  { %v45_v27 = vmul.f32 %v42_v26, %v42_v26 }
  0x8f   :  { %v48_v30 = vsel %vm46_vm6, %v45_v27, 0.0 }
  0x90   :  { %v49_v32 = vadd.f32 %v48_v30, %v47_v29 }
  0x92   :  { %v50_v33 = vrot.slane %v49_v32, 4 }
  0x94   :  { %v51_v37 = vadd.f32 %v50_v33, %v49_v32 }
  0x96   :  { %v52_v38 = vrot.slane %v51_v37, 2 }
  0x98   :  { %v53_v41 = vadd.f32 %v52_v38, %v51_v37 }
  0x9a   :  { %v54_v42 = vrot.slane %v53_v41, 1 }
  0x9c   :  { %v55_v44 = vadd.f32 %v54_v42, %v53_v41 }
  0x9e   :  { %v63_v45 = vrot.slane %v55_v44, %v62_v43 }
  0xa0   :  { %v70_v46 = vrot.slane %v63_v45, %v62_v43 }
  0xa2   :  { %71 = vrot.lane.b32.xlu1 %v70_v46, %s213_s0 }
  0xc6   :  { %115 = vadd.xlane.f32.xlu1 %v114_v48 }
 0x114   :  { %v72_v50 = vpop.permute.xlu1 %71 }
 0x115   :  { %v74_v51 = vadd.f32 %v72_v50, %v43_v49 }
 0x117   :  { %76 = vst.msk [vmem:[#allocation3] sm:$0x1] %vm29_vm0, %v74_v51 }
 0x11e   :  { %v124_v52 = vld [vmem:[#allocation3] sm:$0x1] }
 0x11f   :  { %v125_v53 = vsel %vm29_vm0, %v124_v52, 0.0 }
 0x120   :  { %126 = vadd.xlane.f32.xlu0 %v125_v53 }
 0x153   :  { %v116_v54 = vpop.xlane.xlu1 %115 }
 0x154   :  { %v117_v55 = vrot.slane %v116_v54, 4 }
 0x156   :  { %v118_v56 = vadd.f32 %v117_v55, %v116_v54 }
 0x158   :  { %v119_v57 = vrot.slane %v118_v56, 2 }
 0x15a   :  { %v120_v58 = vadd.f32 %v119_v57, %v118_v56 }
 0x15c   :  { %v121_v59 = vrot.slane %v120_v58, 1 }
 0x15e   :  { %v122_v60 = vadd.f32 %v121_v59, %v120_v58 }
 0x160   :  { %159 = vpush %v122_v60 }
 0x191   :  { %s160_s21 = spop %159 }
 0x192   :  { %s137_s22 = smul.f32 0.004166667, %s160_s21 }
 0x1ad   :  { %v127_v61 = vpop.xlane.xlu0 %126 }
 0x1ae   :  { %v128_v62 = vrot.slane %v127_v61, 4 }
 0x1b0   :  { %v129_v63 = vadd.f32 %v128_v62, %v127_v61 }
 0x1b2   :  { %v130_v0 = vrot.slane %v129_v63, 2 }
 0x1b4   :  { %v131_v1 = vadd.f32 %v130_v0, %v129_v63 }
 0x1b6   :  { %v132_v2 = vrot.slane %v131_v1, 1 }
 0x1b8   :  { %v133_v3 = vadd.f32 %v132_v2, %v131_v1 }
 0x1ba   :  { %161 = vpush %v133_v3 }
 0x1eb   :  { %s162_s23 = spop %161 }
 0x1ec   :  { %s140_s24 = smul.f32 0.004166667, %s162_s23 }
 0x1ee   :  { %s141_s25 = sadd.f32 %s140_s24, %s137_s22 }
 0x1f0   :  { %s142_s26 = smul.f32 2.0, %s141_s25 }
 0x1f2   :  { %144 = sst [smem:[#allocation8]] %s142_s26 }
 0x1f3   :  { %202 = shalt.err (!%p199_p10)
}
 0x1f4   :  { %s214_s5 = smov [#allocation8]  }
 0x1f5   :  { %152 = dma.smem_to_hbm %s214_s5, 16, %s256_s1, [#allocation7]  }
 0x1f6   :  { %205 = dma.done.wait [#allocation7], 16  }
 0x1f7   :  { %206 = vsyncadd [#allocation7], 4294967280 }
 0x1f8   :  { %156 = sfence }
 0x1f9   :  { %157 = vsyncpa [#allocation6], 1 }
 0x1fa   :  { %158 = vsyncpa [#allocation7], 1 }

</bundles_post_ra>
